<compile_context>
chip_gen: v7x
topology: tpu7x:2x2x1
jax: 0.10.0
libtpu: 0.0.40
codegen_flags: <defaults>
</compile_context>

<pallas_src>
import functools

import jax
import jax.numpy as jnp
from jax.experimental import pallas as pl
from jax.experimental.pallas import tpu as pltpu

LANE = 128
SUBLANE = 8


def _round_up(x, m):
    return (x + m - 1) // m * m


def _mlp_kernel(x_ref, w1_ref, b1_ref, w2_ref, b2_ref, o_ref):
    # fc1: Linear + sigmoid.  K = in_size (narrow, Mosaic pads the contraction
    # internally); accumulate in f32 on the MXU, sigmoid on the idle EUP.
    h = jnp.dot(x_ref[...], w1_ref[...], preferred_element_type=jnp.float32)
    h = jax.nn.sigmoid(h + b1_ref[...])
    # fc2: Linear + sigmoid.  N = out_size (narrow output, masked stores).
    y = jnp.dot(h, w2_ref[...], preferred_element_type=jnp.float32)
    o_ref[...] = jax.nn.sigmoid(y + b2_ref[...]).astype(o_ref.dtype)


def pack_params(params):
    """One-time packing of torch-layout params into kernel layout.

    Weights are transposed to (in, out); ONLY the hidden dim is zero-padded to
    a multiple of 128 lanes.  Input and output feature dims stay narrow so HBM
    activation/output traffic is not inflated.
    """
    w1 = params["fc1_w"].T            # (in, hidden)
    w2 = params["fc2_w"].T            # (hidden, out)
    k, h = w1.shape
    _, n = w2.shape
    hp = _round_up(h, LANE)

    w1p = jnp.zeros((k, hp), w1.dtype).at[:, :h].set(w1)
    b1p = jnp.zeros((1, hp), w1.dtype).at[0, :h].set(params["fc1_b"])
    w2p = jnp.zeros((hp, n), w2.dtype).at[:h, :].set(w2)
    b2p = params["fc2_b"].reshape(1, n)
    return {"w1": w1p, "b1": b1p, "w2": w2p, "b2": b2p}


def _choose_batch_tile(batch, batch_tile):
    """Pick a batch tile (multiple of 8 sublanes) such that:
      * per-step VMEM stays tiny (tile capped at `batch_tile` rows),
      * batch padding is always less than one tile (adaptive tile size),
      * the 1-D grid has >= 2 steps when the batch is large enough, so the
        'parallel' batch axis can actually use both v7x TensorCores.
    """
    n_tiles = pl.cdiv(batch, batch_tile)
    if n_tiles < 2 and batch > 2 * SUBLANE:
        n_tiles = 2                                   # v7x: >=2 parallel steps
    bt = _round_up(pl.cdiv(batch, n_tiles), SUBLANE)
    b_pad = _round_up(batch, bt)
    return bt, b_pad


@functools.partial(jax.jit, static_argnames=("batch_tile",))
def multi_net_parent_forward(x, packed, *, batch_tile=1024):
    """x: [B, in_size] float32; packed: output of pack_params()."""
    w1, b1, w2, b2 = packed["w1"], packed["b1"], packed["w2"], packed["b2"]
    batch, in_size = x.shape
    out_size = w2.shape[1]

    bt, b_pad = _choose_batch_tile(batch, batch_tile)
    # Pad only the batch dim (at most bt-1 dead rows), never the feature dim.
    xp = x if b_pad == batch else jnp.pad(x, ((0, b_pad - batch), (0, 0)))

    out = pl.pallas_call(
        _mlp_kernel,
        out_shape=jax.ShapeDtypeStruct((b_pad, out_size), x.dtype),
        grid=(b_pad // bt,),
        in_specs=[
            # Narrow activation tile; last dim == full array dim (in_size).
            pl.BlockSpec((bt, in_size), lambda i: (i, 0)),
            # Weights/biases: constant index_map -> resident in VMEM across
            # all grid steps; single-buffered (no second copy / re-DMA).
            pl.BlockSpec(w1.shape, lambda i: (0, 0), pipeline_mode=pl.Buffered(1)),
            pl.BlockSpec(b1.shape, lambda i: (0, 0), pipeline_mode=pl.Buffered(1)),
            pl.BlockSpec(w2.shape, lambda i: (0, 0), pipeline_mode=pl.Buffered(1)),
            pl.BlockSpec(b2.shape, lambda i: (0, 0), pipeline_mode=pl.Buffered(1)),
        ],
        # Narrow output tile; last dim == full array dim (out_size).
        out_specs=pl.BlockSpec((bt, out_size), lambda i: (i, 0)),
        compiler_params=pltpu.CompilerParams(
            dimension_semantics=("parallel",)),
    )(xp, w1, b1, w2, b2)

    # Only batch padding (if any) needs to be sliced away.
    return out if b_pad == batch else out[:batch]


def init_params(key, input_size, hidden_size, output_size):
    """Deterministic torch-Linear-style init: uniform(-1/sqrt(fan_in), 1/sqrt(fan_in))."""
    k1, k2, k3, k4 = jax.random.split(key, 4)
    bound1 = 1.0 / (input_size ** 0.5)
    bound2 = 1.0 / (hidden_size ** 0.5)
    return {
        "fc1_w": jax.random.uniform(k1, (hidden_size, input_size), jnp.float32,
                                    -bound1, bound1),
        "fc1_b": jax.random.uniform(k2, (hidden_size,), jnp.float32, -bound1, bound1),
        "fc2_w": jax.random.uniform(k3, (output_size, hidden_size), jnp.float32,
                                    -bound2, bound2),
        "fc2_b": jax.random.uniform(k4, (output_size,), jnp.float32, -bound2, bound2),
    }


def _reference(x, params):
    h = jax.nn.sigmoid(x @ params["fc1_w"].T + params["fc1_b"])
    return jax.nn.sigmoid(h @ params["fc2_w"].T + params["fc2_b"])


if __name__ == "__main__":
    input_size = 10
    hidden_size = 32
    output_size = 6
    batch = 8

    key = jax.random.PRNGKey(0)
    kx, kp = jax.random.split(key)
    x = jax.random.normal(kx, (batch, input_size), jnp.float32)
    params = init_params(kp, input_size, hidden_size, output_size)

    # One-time packing (transpose + hidden-dim lane padding) — NOT per call.
    packed = pack_params(params)

    out = multi_net_parent_forward(x, packed)
    out = jax.block_until_ready(out)

    ref = _reference(x, params)
    assert out.shape == (batch, output_size)
    assert jnp.allclose(out, ref, atol=1e-5, rtol=1e-5)
    print("KERNEL_OK")
</pallas_src>

<mosaic_0001>
module attributes {stable_mosaic.version = 11 : i64} {
  func.func @_mlp_kernel(%arg0: i32, %arg1: memref<8x10xf32, #tpu.memory_space<vmem>>, %arg2: memref<10x128xf32, #tpu.memory_space<vmem>>, %arg3: memref<1x128xf32, #tpu.memory_space<vmem>>, %arg4: memref<128x6xf32, #tpu.memory_space<vmem>>, %arg5: memref<1x6xf32, #tpu.memory_space<vmem>>, %arg6: memref<8x6xf32, #tpu.memory_space<vmem>>) attributes {dimension_semantics = [#tpu.dimension_semantics<parallel>], iteration_bounds = array<i64: 1>, scalar_prefetch = 0 : i64, scratch_operands = 0 : i64, tpu.core_type = #tpu.core_type<tc>, window_params = [{transform_indices = @transform_0, window_bounds = array<i64: 8, 10>}, {pipeline_mode = #tpu.pipeline_mode<synchronous>, transform_indices = @transform_1, window_bounds = array<i64: 10, 128>}, {pipeline_mode = #tpu.pipeline_mode<synchronous>, transform_indices = @transform_2, window_bounds = array<i64: 1, 128>}, {pipeline_mode = #tpu.pipeline_mode<synchronous>, transform_indices = @transform_3, window_bounds = array<i64: 128, 6>}, {pipeline_mode = #tpu.pipeline_mode<synchronous>, transform_indices = @transform_4, window_bounds = array<i64: 1, 6>}, {transform_indices = @transform_5, window_bounds = array<i64: 8, 6>}]} {
    %c0 = arith.constant 0 : index
    %c0_0 = arith.constant 0 : index
    %0 = vector.load %arg1[%c0, %c0_0] : memref<8x10xf32, #tpu.memory_space<vmem>>, vector<8x10xf32>
    %c0_1 = arith.constant 0 : index
    %c0_2 = arith.constant 0 : index
    %1 = vector.load %arg2[%c0_1, %c0_2] : memref<10x128xf32, #tpu.memory_space<vmem>>, vector<10x128xf32>
    %cst = arith.constant dense<0.000000e+00> : vector<8x128xf32>
    %2 = tpu.matmul %0, %1, %cst {dimension_numbers = #tpu.dot_dimension_numbers<[1], [0], [0], [1], [0, 0, 1, 1], [], []>} : vector<8x10xf32>, vector<10x128xf32>, vector<8x128xf32> -> vector<8x128xf32>
    %c0_3 = arith.constant 0 : index
    %c0_4 = arith.constant 0 : index
    %3 = vector.load %arg3[%c0_3, %c0_4] : memref<1x128xf32, #tpu.memory_space<vmem>>, vector<1x128xf32>
    %4 = vector.broadcast %3 : vector<1x128xf32> to vector<8x128xf32>
    %5 = arith.addf %2, %4 : vector<8x128xf32>
    %6 = arith.negf %5 : vector<8x128xf32>
    %7 = math.exp %6 : vector<8x128xf32>
    %cst_5 = arith.constant 1.000000e+00 : f32
    %8 = vector.broadcast %cst_5 : f32 to vector<8x128xf32>
    %9 = arith.addf %8, %7 : vector<8x128xf32>
    %10 = arith.divf %8, %9 : vector<8x128xf32>
    %c0_6 = arith.constant 0 : index
    %c0_7 = arith.constant 0 : index
    %11 = vector.load %arg4[%c0_6, %c0_7] : memref<128x6xf32, #tpu.memory_space<vmem>>, vector<128x6xf32>
    %cst_8 = arith.constant dense<0.000000e+00> : vector<8x6xf32>
    %12 = tpu.matmul %10, %11, %cst_8 {dimension_numbers = #tpu.dot_dimension_numbers<[1], [0], [0], [1], [0, 0, 1, 1], [], []>} : vector<8x128xf32>, vector<128x6xf32>, vector<8x6xf32> -> vector<8x6xf32>
    %c0_9 = arith.constant 0 : index
    %c0_10 = arith.constant 0 : index
    %13 = vector.load %arg5[%c0_9, %c0_10] : memref<1x6xf32, #tpu.memory_space<vmem>>, vector<1x6xf32>
    %14 = vector.broadcast %13 : vector<1x6xf32> to vector<8x6xf32>
    %15 = arith.addf %12, %14 : vector<8x6xf32>
    %16 = arith.negf %15 : vector<8x6xf32>
    %17 = math.exp %16 : vector<8x6xf32>
    %cst_11 = arith.constant 1.000000e+00 : f32
    %18 = vector.broadcast %cst_11 : f32 to vector<8x6xf32>
    %19 = arith.addf %18, %17 : vector<8x6xf32>
    %20 = arith.divf %18, %19 : vector<8x6xf32>
    %c0_12 = arith.constant 0 : index
    %c0_13 = arith.constant 0 : index
    %21 = vector.load %arg6[%c0_12, %c0_13] : memref<8x6xf32, #tpu.memory_space<vmem>>, vector<8x6xf32>
    tpu.vector_store %arg6[%c0_12, %c0_13], %20 {strides = array<i32>} : memref<8x6xf32, #tpu.memory_space<vmem>>, vector<8x6xf32>,
    return
  }
  func.func @transform_0(%arg0: i32) -> (i32, i32) {
    %c0_i32 = arith.constant 0 : i32
    %c0_i32_0 = arith.constant 0 : i32
    return %arg0, %c0_i32 : i32, i32
  }
  func.func @transform_1(%arg0: i32) -> (i32, i32) {
    %c0_i32 = arith.constant 0 : i32
    %c0_i32_0 = arith.constant 0 : i32
    %c0_i32_1 = arith.constant 0 : i32
    return %c0_i32, %c0_i32_0 : i32, i32
  }
  func.func @transform_2(%arg0: i32) -> (i32, i32) {
    %c0_i32 = arith.constant 0 : i32
    %c0_i32_0 = arith.constant 0 : i32
    %c0_i32_1 = arith.constant 0 : i32
    return %c0_i32, %c0_i32_0 : i32, i32
  }
  func.func @transform_3(%arg0: i32) -> (i32, i32) {
    %c0_i32 = arith.constant 0 : i32
    %c0_i32_0 = arith.constant 0 : i32
    %c0_i32_1 = arith.constant 0 : i32
    return %c0_i32, %c0_i32_0 : i32, i32
  }
  func.func @transform_4(%arg0: i32) -> (i32, i32) {
    %c0_i32 = arith.constant 0 : i32
    %c0_i32_0 = arith.constant 0 : i32
    %c0_i32_1 = arith.constant 0 : i32
    return %c0_i32, %c0_i32_0 : i32, i32
  }
  func.func @transform_5(%arg0: i32) -> (i32, i32) {
    %c0_i32 = arith.constant 0 : i32
    %c0_i32_0 = arith.constant 0 : i32
    return %arg0, %c0_i32 : i32, i32
  }
}

</mosaic_0001>

<bundles_post_ra>
// kernel: multi_net_parent_forward.1
= control target key start
LH: loop header
LB: loop body
LE: loop exit
PB: predicated region body
PF: predicated region fallthrough
CT: control target
= control target key end

     0   :  { %vm35_vm0 = vcmask 1041408   ;;  %v363_v2 = vmov 0.0|0.0   ;;  %vm364_vm1 = vmmov 1   ;;  %vm365_vm3 = vmmov 0   ;;  %s473_s0 = inlined_call_operand.vmem [shape: f32[8,10], index: 0, kind: input, shape index: {}]   ;;  %s474_s1 = inlined_call_operand.vmem [shape: f32[10,128], index: 1, kind: input, shape index: {}]   ;;  %s475_s2 = inlined_call_operand.vmem [shape: f32[1,128], index: 2, kind: input, shape index: {}]   ;;  %s476_s3 = inlined_call_operand.vmem [shape: f32[128,6], index: 3, kind: input, shape index: {}]   ;;  %s477_s4 = inlined_call_operand.vmem [shape: f32[1,6], index: 4, kind: input, shape index: {}]   ;;  %s478_s5 = inlined_call_operand.hbm [shape: f32[8,6], index: 5, kind: output, shape index: {}]  }
   0x1   :  { %v22_v0 = vld [vmem:[%s474_s1] sm:$0xff]  ;;  %v23_v1 = vld [vmem:[%s474_s1 + $0x8] sm:$0x3]  ;;  %298 = vmatprep.subr.bf16.mxu0 %v363_v2  ;;  %vm300_vm2 = vmpackc.low %vm35_vm0, %vm364_vm1  ;;  %302 = vmatprep.subr.bf16.mxu1 %v363_v2  ;;  %v366_v5 = vmov 0.0  }
   0x2   :  { %v299_v3 = vpack.c.bf16 %v23_v1, %v22_v0  ;;  %v115_v4 = vld [vmem:[%s476_s3] sm:$0xff]  ;;  %260 = vmatprep.mubr.msk.f32.mxu0 %vm365_vm3, %v366_v5  ;;  %v116_v6 = vld [vmem:[%s476_s3 + $0x8] sm:$0xff]  ;;  %295 = vmatprep.mubr.msk.f32.mxu1 %vm365_vm3, %v366_v5 }
   0x3   :  { %10 = vsyncpa [#allocation3], 0  ;;  %v21_v7 = vld [vmem:[%s473_s0] sm:$0xff]  ;;  %vm31_vm4 = vcmask 80896   ;;  %v303_v8 = vpack.c.bf16 %v116_v6, %v115_v4  ;;  %v117_v9 = vld [vmem:[%s476_s3 + $0x10] sm:$0xff]  ;;  %vm214_vm5 = vcmask 48128  }
   0x4   :  { %301 = vmatpush3.bf16.msk.msra.mxu0 %vm300_vm2, %v299_v3  ;;  %v118_v10 = vld [vmem:[%s476_s3 + $0x18] sm:$0xff]  ;;  %v119_v12 = vld [vmem:[%s476_s3 + $0x20] sm:$0xff]  ;;  %v120_v13 = vld [vmem:[%s476_s3 + $0x28] sm:$0xff] }
   0x5   :  { %304 = vmatpush3.bf16.msra.mxu1 %v303_v8  ;;  %v306_v11 = vpack.c.bf16 %v118_v10, %v117_v9  ;;  %v309_v14 = vpack.c.bf16 %v120_v13, %v119_v12  ;;  %v121_v15 = vld [vmem:[%s476_s3 + $0x30] sm:$0xff]  ;;  %v122_v16 = vld [vmem:[%s476_s3 + $0x38] sm:$0xff]  ;;  %v123_v18 = vld [vmem:[%s476_s3 + $0x40] sm:$0xff] }
   0x6   :  { %305 = vmatprep.subr.bf16.mxu1 %v363_v2  ;;  %v312_v17 = vpack.c.bf16 %v122_v16, %v121_v15  ;;  %v124_v19 = vld [vmem:[%s476_s3 + $0x48] sm:$0xff]  ;;  %v125_v21 = vld [vmem:[%s476_s3 + $0x50] sm:$0xff]  ;;  %v126_v22 = vld [vmem:[%s476_s3 + $0x58] sm:$0xff] }
   0x7   :  { %261 = vmatmul.mubr.msk.f32.vlgmr.msra.gmra.mrb[0].mxu0 %vm31_vm4, %v21_v7  ;;  %v315_v20 = vpack.c.bf16 %v124_v19, %v123_v18  ;;  %v318_v23 = vpack.c.bf16 %v126_v22, %v125_v21  ;;  %v127_v24 = vld [vmem:[%s476_s3 + $0x60] sm:$0xff]  ;;  %v128_v25 = vld [vmem:[%s476_s3 + $0x68] sm:$0xff]  ;;  %v129_v27 = vld [vmem:[%s476_s3 + $0x70] sm:$0xff] }
   0x8   :  { %v321_v26 = vpack.c.bf16 %v128_v25, %v127_v24  ;;  %v130_v28 = vld [vmem:[%s476_s3 + $0x78] sm:$0xff]  ;;  %v230_v30 = vld [vmem:[%s475_s2] ss:$0 sm:$0xff]  ;;  %s367_s2 = smov [#allocation2]  }
   0x9   :  { %307 = vmatpush3.bf16.msra.mxu1 %v306_v11  ;;  %v324_v29 = vpack.c.bf16 %v130_v28, %v129_v27  ;;  %v234_v38 = vld [vmem:[%s477_s4] ss:$0 sm:$0xff]  ;;  %s222_s6 = sshll.u32 %s367_s2, 4  ;;  %s223_s6 = int_to_ptr.vmem [resolvable:$true] %s222_s6 }
   0xa   :  { %308 = vmatprep.subr.bf16.mxu1 %v363_v2  ;;  %s339_s7 = scalar_lea.vmem %s223_s6, 128  ;;  %p344_p1 = scmp.lt.s32.totalorder %s223_s6, %s223_s6 }
   0xb   :  { %p340_p0 = scmp.ne.s32.totalorder %s223_s6, %s339_s7  ;;  %p345_p2 = scmp.lt.s32.totalorder %s339_s7, %s339_s7 }
   0xd   :  { %310 = vmatpush3.bf16.msra.mxu1 %v309_v14  ;;  %p346_p3 = por %p345_p2, %p344_p1 }
   0xe   :  { %311 = vmatprep.subr.bf16.mxu1 %v363_v2 }
   0xf   :  { %p347_p4 = pnand %p346_p3, %p340_p0 }
  0x11   :  { %313 = vmatpush3.bf16.msra.mxu1 %v312_v17 }
  0x12   :  { %314 = vmatprep.subr.bf16.mxu1 %v363_v2 }
  0x15   :  { %316 = vmatpush3.bf16.msra.mxu1 %v315_v20 }
  0x16   :  { %317 = vmatprep.subr.bf16.mxu1 %v363_v2 }
  0x19   :  { %319 = vmatpush3.bf16.msra.mxu1 %v318_v23 }
  0x1a   :  { %320 = vmatprep.subr.bf16.mxu1 %v363_v2 }
  0x1d   :  { %322 = vmatpush3.bf16.msra.mxu1 %v321_v26 }
  0x1e   :  { %323 = vmatprep.subr.bf16.mxu1 %v363_v2 }
  0x21   :  { %325 = vmatpush3.bf16.msra.mxu1 %v324_v29 }
  0xda   :  { %v105_v31 = vpop.f32.mrb[0].mxu0 }
  0xdb   :  { %v106_v32 = vadd.f32 %v230_v30, %v105_v31  ;;  %v262_v33 = vpop.f32.mrb[1].mxu0 }
  0xdd   :  { %v233_v34 = vmul.f32 -1.442695, %v106_v32 }
  0xdf   :  { %331 = vpow2.f32 %v233_v34 }
  0xe9   :  { %v332_v35 = vpop.eup %331 }
  0xea   :  { %v112_v36 = vadd.f32 1.0, %v332_v35 }
  0xec   :  { %333 = vrcp.f32 %v112_v36 }
  0xf6   :  { %v334_v37 = vpop.eup %333 }
  0xf7   :  { %296 = vmatmul.mubr.f32.vlgmr.msra.gmra.mrb[0].mxu1 %v334_v37 }
 0x1ca   :  { %v204_v39 = vpop.f32.mrb[0].mxu1 }
 0x1cb   :  { %v205_v40 = vadd.f32 %v234_v38, %v204_v39  ;;  %v297_v41 = vpop.f32.mrb[1].mxu1 }
 0x1cd   :  { %v235_v42 = vmul.f32 -1.442695, %v205_v40 }
 0x1cf   :  { %335 = vpow2.f32 %v235_v42 }
 0x1d9   :  { %v336_v43 = vpop.eup %335 }
 0x1da   :  { %v211_v44 = vadd.f32 1.0, %v336_v43 }
 0x1dc   :  { %337 = vrcp.f32 %v211_v44 }
 0x1e6   :  { %v338_v45 = vpop.eup %337 }
 0x1e7   :  { %215 = vst.msk [vmem:[#allocation2] sm:$0xff] %vm214_vm5, %v338_v45 }
 0x1e8   :  { %350 = shalt.err (!%p347_p4)
}
 0x1e9   :  { %s351_s8 = scalar_lea.hbm %s478_s5, 128 }
 0x1ea   :  { %p352_p5 = scmp.ne.s32.totalorder %s478_s5, %s351_s8  ;;  %p355_p6 = scmp.lt.u32.totalorder %s351_s8, %s478_s5 }
 0x1ec   :  { %p357_p7 = pnand %p355_p6, %p352_p5 }
 0x1ee   :  { %360 = shalt.err (!%p357_p7)
}
 0x1ef   :  { %225 = dma.vmem_to_hbm [thread:$0]  %s223_s6, 128, %s478_s5, [#allocation3]  }
 0x1f0   :  { %361 = dma.done.wait [#allocation3], 128  }
 0x1f1   :  { %362 = vsyncadd [#allocation3], 4294967168 }
 0x1f2   :  { %229 = vsyncpa [#allocation3], 1 }

</bundles_post_ra>
